<compile_context>
chip_gen: v7x
topology: tpu7x:2x2x1
jax: 0.10.0
libtpu: 0.0.40
codegen_flags: <defaults>
</compile_context>

<pallas_src>
import math

import jax
import jax.numpy as jnp
from jax.experimental import pallas as pl
from jax.experimental.pallas import tpu as pltpu

# ------------------------- model dimensions -------------------------------
B = 2              # batch
S = 8              # sequence length
BS = B * S         # flattened rows processed in one kernel step
D = 32             # hidden size (stand-in for 768)
NUM_HEADS = 4
DH = D // NUM_HEADS
HBS = NUM_HEADS * BS          # heads stacked on the sublane axis
DI = 64            # intermediate (FFN) size
L = 58             # fc output features (same as original fc(768, 58))
L_PAD = 128        # lane-dense padded output width
VOCAB = 100
LN_EPS = 1e-12     # BERT layer-norm epsilon

# packed weight slab (D, 512): 128-lane-aligned slots
QKV_OFF = 0        # fused head-grouped QKV, 96 valid lanes
WO_OFF = 128       # Wo, 32 valid lanes
W1_OFF = 256       # W1, 64 valid lanes
FC_OFF = 384       # fc head, padded to 128 lanes
WA_WIDTH = 512

# packed small-vector table rows (NVEC, 128)
ROW_BQKV, ROW_BO, ROW_LN1G, ROW_LN1B, ROW_B1, ROW_B2, ROW_LN2G, ROW_LN2B, ROW_FCB = range(9)
NVEC = 9


def _layernorm(x, gamma, beta):
    mu = jnp.mean(x, axis=-1, keepdims=True)
    var = jnp.mean((x - mu) ** 2, axis=-1, keepdims=True)
    return (x - mu) * jax.lax.rsqrt(var + LN_EPS) * gamma + beta


# ------------------------------ kernel -------------------------------------
def bert_layer_kernel(x_ref, mask_ref, wa_ref, w2_ref, vec_ref, out_ref):
    x = x_ref[...]          # (BS, D)
    mask = mask_ref[...]    # (HBS, HBS) additive mask built in the wrapper
    vec = vec_ref[...]      # (NVEC, 128) packed bias/LN vectors

    # --- fused QKV projection: one (BS, D) @ (D, 128) MXU push --------------
    # Columns are head-grouped: [q_h | k_h | v_h] per head (24 lanes/head).
    qkv = jnp.dot(x, wa_ref[:, QKV_OFF:QKV_OFF + 128],
                  preferred_element_type=jnp.float32) + vec[ROW_BQKV:ROW_BQKV + 1, :]

    # --- stack heads on the sublane axis: (NUM_HEADS*BS, 3*DH) --------------
    qkv_st = jnp.concatenate(
        [qkv[:, h * 3 * DH:(h + 1) * 3 * DH] for h in range(NUM_HEADS)], axis=0)
    q_st = qkv_st[:, 0:DH]
    k_st = qkv_st[:, DH:2 * DH]
    v_st = qkv_st[:, 2 * DH:3 * DH]

    # --- all heads in one scores / softmax / context pass -------------------
    scale = 1.0 / math.sqrt(DH)
    sc = jnp.dot(q_st, k_st.T, preferred_element_type=jnp.float32) * scale + mask
    sc = sc - jnp.max(sc, axis=-1, keepdims=True)
    p = jnp.exp(sc)
    p = p * pl.reciprocal(jnp.sum(p, axis=-1, keepdims=True), approx=True)
    ctx_st = jnp.dot(p, v_st, preferred_element_type=jnp.float32)      # (HBS, DH)

    # --- unstack heads back onto lanes, single Wo matmul ---------------------
    ctx = jnp.concatenate(
        [ctx_st[h * BS:(h + 1) * BS, :] for h in range(NUM_HEADS)], axis=1)  # (BS, D)
    attn = jnp.dot(ctx, wa_ref[:, WO_OFF:WO_OFF + D],
                   preferred_element_type=jnp.float32) + vec[ROW_BO:ROW_BO + 1, :D]

    h1 = _layernorm(x + attn,
                    vec[ROW_LN1G:ROW_LN1G + 1, :D], vec[ROW_LN1B:ROW_LN1B + 1, :D])

    # --- feed-forward --------------------------------------------------------
    ff = jnp.dot(h1, wa_ref[:, W1_OFF:W1_OFF + DI],
                 preferred_element_type=jnp.float32) + vec[ROW_B1:ROW_B1 + 1, :DI]
    # TODO(synk): HuggingFace BERT uses exact erf GELU; tanh approximation kept here.
    ff = jax.nn.gelu(ff, approximate=True)
    ff = jnp.dot(ff, w2_ref[...],
                 preferred_element_type=jnp.float32) + vec[ROW_B2:ROW_B2 + 1, :D]
    h2 = _layernorm(h1 + ff,
                    vec[ROW_LN2G:ROW_LN2G + 1, :D], vec[ROW_LN2B:ROW_LN2B + 1, :D])

    # --- classification head fc(D -> 58), padded to 128 lanes ---------------
    logits = jnp.dot(h2, wa_ref[:, FC_OFF:FC_OFF + L_PAD],
                     preferred_element_type=jnp.float32) + vec[ROW_FCB:ROW_FCB + 1, :]
    # TODO(synk): dropout after fc is identity (eval mode).
    out_ref[...] = logits.astype(out_ref.dtype)


# --------------------- one-time parameter packing ---------------------------
def _pad_lanes(a, width):
    return jnp.zeros((a.shape[0], width), jnp.float32).at[:, :a.shape[1]].set(a)


def prepare_params(p):
    """Hoisted out of the per-call wrapper: fuse QKV (head-grouped), pad fc to
    128 lanes, and pack everything into 3 arrays."""
    qkv_cols, bqkv_cols = [], []
    for h in range(NUM_HEADS):
        sl = slice(h * DH, (h + 1) * DH)
        qkv_cols += [p["wq"][:, sl], p["wk"][:, sl], p["wv"][:, sl]]
        bqkv_cols += [p["bq"][:, sl], p["bk"][:, sl], p["bv"][:, sl]]
    wqkv = jnp.concatenate(qkv_cols, axis=1)       # (D, 3D) head-grouped
    bqkv = jnp.concatenate(bqkv_cols, axis=1)      # (1, 3D) head-grouped

    wa = jnp.concatenate([
        _pad_lanes(wqkv, 128),        # slot 0: fused QKV (96 used)
        _pad_lanes(p["wo"], 128),     # slot 1: Wo        (32 used)
        _pad_lanes(p["w1"], 128),     # slot 2: W1        (64 used)
        _pad_lanes(p["fc_w"], 128),   # slot 3: fc head   (58 used)
    ], axis=1)                        # (D, 512)

    vec = jnp.concatenate([
        _pad_lanes(bqkv, 128),
        _pad_lanes(p["bo"], 128),
        _pad_lanes(p["ln1_g"], 128), _pad_lanes(p["ln1_b"], 128),
        _pad_lanes(p["b1"], 128),
        _pad_lanes(p["b2"], 128),
        _pad_lanes(p["ln2_g"], 128), _pad_lanes(p["ln2_b"], 128),
        _pad_lanes(p["fc_b"], 128),
    ], axis=0)                        # (NVEC, 128)

    return {"wa": wa, "w2": p["w2"].astype(jnp.float32), "vec": vec}


def _build_mask(attention_mask):
    """(HBS, HBS) additive mask: cross-head + cross-example blocks get -1e9,
    padded keys get -10000 (matches the HF-style additive padding mask)."""
    idx = jnp.arange(HBS)
    head = idx // BS
    ex = (idx % BS) // S
    same = (head[:, None] == head[None, :]) & (ex[:, None] == ex[None, :])
    key_pad = (1.0 - attention_mask.reshape(1, BS)) * -10000.0      # (1, BS)
    key_pad_big = jnp.tile(key_pad, (1, NUM_HEADS))                 # (1, HBS)
    return (jnp.where(same, 0.0, -1e9) + key_pad_big).astype(jnp.float32)


# ------------------------------ wrapper -------------------------------------
@jax.jit
def bert_layer_pallas(x_emb, attention_mask, wa, w2, vec):
    """x_emb: (B, S, D) float32 embeddings; attention_mask: (B, S) 1/0 mask."""
    x_flat = x_emb.reshape(BS, D).astype(jnp.float32)
    mask = _build_mask(attention_mask)

    vmem_spec = pl.BlockSpec(memory_space=pltpu.MemorySpace.VMEM)
    # Single invocation, no grid: at BS=16 a grid would only add step overhead.
    # When B*S grows, add a row-block grid axis with
    # compiler_params=pltpu.CompilerParams(dimension_semantics=("parallel",))
    # so v7x shards row blocks across both TensorCores.
    out_flat = pl.pallas_call(
        bert_layer_kernel,
        out_shape=jax.ShapeDtypeStruct((BS, L_PAD), jnp.float32),
        in_specs=[vmem_spec] * 5,
        out_specs=vmem_spec,
    )(x_flat, mask, wa, w2, vec)

    return out_flat.reshape(B, S, L_PAD)[:, :, :L]


# ---------------------- pure-JAX reference (for sanity) ---------------------
def bert_layer_ref(x_emb, add_mask, p):
    outs = []
    for b in range(B):
        x = x_emb[b]
        m = add_mask[b]
        q = x @ p["wq"] + p["bq"]
        k = x @ p["wk"] + p["bk"]
        v = x @ p["wv"] + p["bv"]
        parts = []
        for h in range(NUM_HEADS):
            qs, ks, vs = (t[:, h * DH:(h + 1) * DH] for t in (q, k, v))
            sc = qs @ ks.T / math.sqrt(DH) + m
            pr = jax.nn.softmax(sc, axis=-1)
            parts.append(pr @ vs)
        ctx = jnp.concatenate(parts, axis=-1)
        h1 = _layernorm(x + (ctx @ p["wo"] + p["bo"]), p["ln1_g"], p["ln1_b"])
        ff = jax.nn.gelu(h1 @ p["w1"] + p["b1"], approximate=True) @ p["w2"] + p["b2"]
        h2 = _layernorm(h1 + ff, p["ln2_g"], p["ln2_b"])
        outs.append(h2 @ p["fc_w"] + p["fc_b"])
    return jnp.stack(outs)


# ------------------------------ setup ---------------------------------------
def init_params(key):
    ks = jax.random.split(key, 12)
    n = lambda k, shp: (0.02 * jax.random.normal(k, shp)).astype(jnp.float32)
    zeros = lambda shp: jnp.zeros(shp, jnp.float32)
    ones = lambda shp: jnp.ones(shp, jnp.float32)
    return {
        "tok_emb": n(ks[0], (VOCAB, D)),
        "pos_emb": n(ks[1], (S, D)),
        "emb_ln_g": ones((1, D)), "emb_ln_b": zeros((1, D)),
        "wq": n(ks[2], (D, D)), "bq": zeros((1, D)),
        "wk": n(ks[3], (D, D)), "bk": zeros((1, D)),
        "wv": n(ks[4], (D, D)), "bv": zeros((1, D)),
        "wo": n(ks[5], (D, D)), "bo": zeros((1, D)),
        "ln1_g": ones((1, D)), "ln1_b": zeros((1, D)),
        "w1": n(ks[6], (D, DI)), "b1": zeros((1, DI)),
        "w2": n(ks[7], (DI, D)), "b2": zeros((1, D)),
        "ln2_g": ones((1, D)), "ln2_b": zeros((1, D)),
        "fc_w": n(ks[8], (D, L)), "fc_b": zeros((1, L)),
    }


if __name__ == "__main__":
    key = jax.random.PRNGKey(0)
    kp, ki = jax.random.split(key)
    params = init_params(kp)
    prepped = prepare_params(params)   # one-time weight fusion / packing

    # deterministic inputs: token ids + attention mask (last 2 tokens of the
    # second example are padding)
    input_ids = jax.random.randint(ki, (B, S), 0, VOCAB, dtype=jnp.int32)
    attention_mask = jnp.ones((B, S), jnp.float32).at[1, -2:].set(0.0)

    # --- plain-JAX glue: embeddings + embedding LayerNorm --------------------
    # TODO(synk): at real sizes fold the embedding gather (scalar-prefetched
    # ids) and embedding LayerNorm into the kernel to amortize launch cost.
    x_emb = params["tok_emb"][input_ids] + params["pos_emb"][None, :, :]
    x_emb = _layernorm(x_emb, params["emb_ln_g"], params["emb_ln_b"])

    out = bert_layer_pallas(x_emb, attention_mask,
                            prepped["wa"], prepped["w2"], prepped["vec"])
    out = jax.block_until_ready(out)

    add_mask_ref = ((1.0 - attention_mask) * -10000.0)[:, None, :]   # (B, 1, S)
    ref = bert_layer_ref(x_emb, add_mask_ref, params)

    assert out.shape == (B, S, L)
    assert jnp.allclose(out, ref, atol=5e-2, rtol=5e-2)
    print("KERNEL_OK")
</pallas_src>

<mosaic_0001>
module attributes {stable_mosaic.version = 11 : i64} {
  func.func @bert_layer_kernel(%arg0: memref<16x32xf32, #tpu.memory_space<vmem>>, %arg1: memref<64x64xf32, #tpu.memory_space<vmem>>, %arg2: memref<32x512xf32, #tpu.memory_space<vmem>>, %arg3: memref<64x32xf32, #tpu.memory_space<vmem>>, %arg4: memref<9x128xf32, #tpu.memory_space<vmem>>, %arg5: memref<16x128xf32, #tpu.memory_space<vmem>>) attributes {dimension_semantics = [], scalar_prefetch = 0 : i64, scratch_operands = 0 : i64, tpu.core_type = #tpu.core_type<tc>} {
    %c0 = arith.constant 0 : index
    %c0_0 = arith.constant 0 : index
    %0 = vector.load %arg0[%c0, %c0_0] : memref<16x32xf32, #tpu.memory_space<vmem>>, vector<16x32xf32>
    %c0_1 = arith.constant 0 : index
    %c0_2 = arith.constant 0 : index
    %1 = vector.load %arg1[%c0_1, %c0_2] : memref<64x64xf32, #tpu.memory_space<vmem>>, vector<64x64xf32>
    %c0_3 = arith.constant 0 : index
    %c0_4 = arith.constant 0 : index
    %2 = vector.load %arg4[%c0_3, %c0_4] : memref<9x128xf32, #tpu.memory_space<vmem>>, vector<9x128xf32>
    %c0_5 = arith.constant 0 : index
    %c0_6 = arith.constant 0 : index
    %3 = vector.load %arg2[%c0_5, %c0_6] : memref<32x512xf32, #tpu.memory_space<vmem>>, vector<32x128xf32>
    %cst = arith.constant dense<0.000000e+00> : vector<16x128xf32>
    %4 = tpu.matmul %0, %3, %cst {dimension_numbers = #tpu.dot_dimension_numbers<[1], [0], [0], [1], [0, 0, 1, 1], [], []>} : vector<16x32xf32>, vector<32x128xf32>, vector<16x128xf32> -> vector<16x128xf32>
    %5 = vector.extract_strided_slice %2 {offsets = [0, 0], sizes = [1, 128], strides = [1, 1]} : vector<9x128xf32> to vector<1x128xf32>
    %6 = vector.broadcast %5 : vector<1x128xf32> to vector<16x128xf32>
    %7 = arith.addf %4, %6 : vector<16x128xf32>
    %8 = vector.extract_strided_slice %7 {offsets = [0, 0], sizes = [16, 24], strides = [1, 1]} : vector<16x128xf32> to vector<16x24xf32>
    %9 = vector.extract_strided_slice %7 {offsets = [0, 24], sizes = [16, 24], strides = [1, 1]} : vector<16x128xf32> to vector<16x24xf32>
    %10 = vector.extract_strided_slice %7 {offsets = [0, 48], sizes = [16, 24], strides = [1, 1]} : vector<16x128xf32> to vector<16x24xf32>
    %11 = vector.extract_strided_slice %7 {offsets = [0, 72], sizes = [16, 24], strides = [1, 1]} : vector<16x128xf32> to vector<16x24xf32>
    %12 = tpu.concatenate %8, %9, %10, %11 in 0 : vector<16x24xf32>, vector<16x24xf32>, vector<16x24xf32>, vector<16x24xf32> -> vector<64x24xf32>
    %13 = vector.extract_strided_slice %12 {offsets = [0, 0], sizes = [64, 8], strides = [1, 1]} : vector<64x24xf32> to vector<64x8xf32>
    %14 = vector.extract_strided_slice %12 {offsets = [0, 8], sizes = [64, 8], strides = [1, 1]} : vector<64x24xf32> to vector<64x8xf32>
    %15 = vector.extract_strided_slice %12 {offsets = [0, 16], sizes = [64, 8], strides = [1, 1]} : vector<64x24xf32> to vector<64x8xf32>
    %16 = tpu.transpose %14, [1, 0] : vector<64x8xf32> -> vector<8x64xf32>
    %cst_7 = arith.constant dense<0.000000e+00> : vector<64x64xf32>
    %17 = tpu.matmul %13, %16, %cst_7 {dimension_numbers = #tpu.dot_dimension_numbers<[1], [0], [0], [1], [0, 0, 1, 1], [], []>} : vector<64x8xf32>, vector<8x64xf32>, vector<64x64xf32> -> vector<64x64xf32>
    %cst_8 = arith.constant 0.353553385 : f32
    %18 = vector.broadcast %cst_8 : f32 to vector<64x64xf32>
    %19 = arith.mulf %17, %18 : vector<64x64xf32>
    %20 = arith.addf %19, %1 : vector<64x64xf32>
    %cst_9 = arith.constant dense<0xFF800000> : vector<64xf32>
    %21 = vector.multi_reduction <maximumf>, %20, %cst_9 [1] : vector<64x64xf32> to vector<64xf32>
    %22 = vector.shape_cast %21 : vector<64xf32> to vector<64x1xf32>
    %23 = vector.broadcast %22 : vector<64x1xf32> to vector<64x64xf32>
    %24 = arith.subf %20, %23 : vector<64x64xf32>
    %25 = math.exp %24 : vector<64x64xf32>
    %cst_10 = arith.constant dense<0.000000e+00> : vector<64xf32>
    %26 = vector.multi_reduction <add>, %25, %cst_10 [1] : vector<64x64xf32> to vector<64xf32>
    %27 = vector.shape_cast %26 : vector<64xf32> to vector<64x1xf32>
    %28 = tpu.reciprocal %27 {approx = true} : vector<64x1xf32> -> vector<64x1xf32>
    %29 = vector.broadcast %28 : vector<64x1xf32> to vector<64x64xf32>
    %30 = arith.mulf %25, %29 : vector<64x64xf32>
    %cst_11 = arith.constant dense<0.000000e+00> : vector<64x8xf32>
    %31 = tpu.matmul %30, %15, %cst_11 {dimension_numbers = #tpu.dot_dimension_numbers<[1], [0], [0], [1], [0, 0, 1, 1], [], []>} : vector<64x64xf32>, vector<64x8xf32>, vector<64x8xf32> -> vector<64x8xf32>
    %32 = vector.extract_strided_slice %31 {offsets = [0, 0], sizes = [16, 8], strides = [1, 1]} : vector<64x8xf32> to vector<16x8xf32>
    %33 = vector.extract_strided_slice %31 {offsets = [16, 0], sizes = [16, 8], strides = [1, 1]} : vector<64x8xf32> to vector<16x8xf32>
    %34 = vector.extract_strided_slice %31 {offsets = [32, 0], sizes = [16, 8], strides = [1, 1]} : vector<64x8xf32> to vector<16x8xf32>
    %35 = vector.extract_strided_slice %31 {offsets = [48, 0], sizes = [16, 8], strides = [1, 1]} : vector<64x8xf32> to vector<16x8xf32>
    %36 = tpu.concatenate %32, %33, %34, %35 in 1 : vector<16x8xf32>, vector<16x8xf32>, vector<16x8xf32>, vector<16x8xf32> -> vector<16x32xf32>
    %c0_12 = arith.constant 0 : index
    %c128 = arith.constant 128 : index
    %37 = vector.load %arg2[%c0_12, %c128] : memref<32x512xf32, #tpu.memory_space<vmem>>, vector<32x32xf32>
    %cst_13 = arith.constant dense<0.000000e+00> : vector<16x32xf32>
    %38 = tpu.matmul %36, %37, %cst_13 {dimension_numbers = #tpu.dot_dimension_numbers<[1], [0], [0], [1], [0, 0, 1, 1], [], []>} : vector<16x32xf32>, vector<32x32xf32>, vector<16x32xf32> -> vector<16x32xf32>
    %39 = vector.extract_strided_slice %2 {offsets = [1, 0], sizes = [1, 32], strides = [1, 1]} : vector<9x128xf32> to vector<1x32xf32>
    %40 = vector.broadcast %39 : vector<1x32xf32> to vector<16x32xf32>
    %41 = arith.addf %38, %40 : vector<16x32xf32>
    %42 = arith.addf %0, %41 : vector<16x32xf32>
    %43 = vector.extract_strided_slice %2 {offsets = [2, 0], sizes = [1, 32], strides = [1, 1]} : vector<9x128xf32> to vector<1x32xf32>
    %44 = vector.extract_strided_slice %2 {offsets = [3, 0], sizes = [1, 32], strides = [1, 1]} : vector<9x128xf32> to vector<1x32xf32>
    %cst_14 = arith.constant dense<0.000000e+00> : vector<16xf32>
    %45 = vector.multi_reduction <add>, %42, %cst_14 [1] : vector<16x32xf32> to vector<16xf32>
    %46 = vector.shape_cast %45 : vector<16xf32> to vector<16x1xf32>
    %cst_15 = arith.constant 3.200000e+01 : f32
    %47 = vector.broadcast %cst_15 : f32 to vector<16x1xf32>
    %48 = arith.divf %46, %47 : vector<16x1xf32>
    %49 = vector.broadcast %48 : vector<16x1xf32> to vector<16x32xf32>
    %50 = arith.subf %42, %49 : vector<16x32xf32>
    %51 = arith.mulf %50, %50 : vector<16x32xf32>
    %cst_16 = arith.constant dense<0.000000e+00> : vector<16xf32>
    %52 = vector.multi_reduction <add>, %51, %cst_16 [1] : vector<16x32xf32> to vector<16xf32>
    %53 = vector.shape_cast %52 : vector<16xf32> to vector<16x1xf32>
    %cst_17 = arith.constant 3.200000e+01 : f32
    %54 = vector.broadcast %cst_17 : f32 to vector<16x1xf32>
    %55 = arith.divf %53, %54 : vector<16x1xf32>
    %56 = vector.broadcast %48 : vector<16x1xf32> to vector<16x32xf32>
    %57 = arith.subf %42, %56 : vector<16x32xf32>
    %cst_18 = arith.constant 9.99999996E-13 : f32
    %58 = vector.broadcast %cst_18 : f32 to vector<16x1xf32>
    %59 = arith.addf %55, %58 : vector<16x1xf32>
    %60 = math.rsqrt %59 : vector<16x1xf32>
    %61 = vector.broadcast %60 : vector<16x1xf32> to vector<16x32xf32>
    %62 = arith.mulf %57, %61 : vector<16x32xf32>
    %63 = vector.broadcast %43 : vector<1x32xf32> to vector<16x32xf32>
    %64 = arith.mulf %62, %63 : vector<16x32xf32>
    %65 = vector.broadcast %44 : vector<1x32xf32> to vector<16x32xf32>
    %66 = arith.addf %64, %65 : vector<16x32xf32>
    %c0_19 = arith.constant 0 : index
    %c256 = arith.constant 256 : index
    %67 = vector.load %arg2[%c0_19, %c256] : memref<32x512xf32, #tpu.memory_space<vmem>>, vector<32x64xf32>
    %cst_20 = arith.constant dense<0.000000e+00> : vector<16x64xf32>
    %68 = tpu.matmul %66, %67, %cst_20 {dimension_numbers = #tpu.dot_dimension_numbers<[1], [0], [0], [1], [0, 0, 1, 1], [], []>} : vector<16x32xf32>, vector<32x64xf32>, vector<16x64xf32> -> vector<16x64xf32>
    %69 = vector.extract_strided_slice %2 {offsets = [4, 0], sizes = [1, 64], strides = [1, 1]} : vector<9x128xf32> to vector<1x64xf32>
    %70 = vector.broadcast %69 : vector<1x64xf32> to vector<16x64xf32>
    %71 = arith.addf %68, %70 : vector<16x64xf32>
    %72 = arith.mulf %71, %71 : vector<16x64xf32>
    %73 = arith.mulf %71, %72 : vector<16x64xf32>
    %cst_21 = arith.constant 4.471500e-02 : f32
    %74 = vector.broadcast %cst_21 : f32 to vector<16x64xf32>
    %75 = arith.mulf %74, %73 : vector<16x64xf32>
    %76 = arith.addf %71, %75 : vector<16x64xf32>
    %cst_22 = arith.constant 0.797884583 : f32
    %77 = vector.broadcast %cst_22 : f32 to vector<16x64xf32>
    %78 = arith.mulf %77, %76 : vector<16x64xf32>
    %79 = math.tanh %78 : vector<16x64xf32>
    %cst_23 = arith.constant 1.000000e+00 : f32
    %80 = vector.broadcast %cst_23 : f32 to vector<16x64xf32>
    %81 = arith.addf %80, %79 : vector<16x64xf32>
    %cst_24 = arith.constant 5.000000e-01 : f32
    %82 = vector.broadcast %cst_24 : f32 to vector<16x64xf32>
    %83 = arith.mulf %82, %81 : vector<16x64xf32>
    %84 = arith.mulf %71, %83 : vector<16x64xf32>
    %c0_25 = arith.constant 0 : index
    %c0_26 = arith.constant 0 : index
    %85 = vector.load %arg3[%c0_25, %c0_26] : memref<64x32xf32, #tpu.memory_space<vmem>>, vector<64x32xf32>
    %cst_27 = arith.constant dense<0.000000e+00> : vector<16x32xf32>
    %86 = tpu.matmul %84, %85, %cst_27 {dimension_numbers = #tpu.dot_dimension_numbers<[1], [0], [0], [1], [0, 0, 1, 1], [], []>} : vector<16x64xf32>, vector<64x32xf32>, vector<16x32xf32> -> vector<16x32xf32>
    %87 = vector.extract_strided_slice %2 {offsets = [5, 0], sizes = [1, 32], strides = [1, 1]} : vector<9x128xf32> to vector<1x32xf32>
    %88 = vector.broadcast %87 : vector<1x32xf32> to vector<16x32xf32>
    %89 = arith.addf %86, %88 : vector<16x32xf32>
    %90 = arith.addf %66, %89 : vector<16x32xf32>
    %91 = vector.extract_strided_slice %2 {offsets = [6, 0], sizes = [1, 32], strides = [1, 1]} : vector<9x128xf32> to vector<1x32xf32>
    %92 = vector.extract_strided_slice %2 {offsets = [7, 0], sizes = [1, 32], strides = [1, 1]} : vector<9x128xf32> to vector<1x32xf32>
    %cst_28 = arith.constant dense<0.000000e+00> : vector<16xf32>
    %93 = vector.multi_reduction <add>, %90, %cst_28 [1] : vector<16x32xf32> to vector<16xf32>
    %94 = vector.shape_cast %93 : vector<16xf32> to vector<16x1xf32>
    %cst_29 = arith.constant 3.200000e+01 : f32
    %95 = vector.broadcast %cst_29 : f32 to vector<16x1xf32>
    %96 = arith.divf %94, %95 : vector<16x1xf32>
    %97 = vector.broadcast %96 : vector<16x1xf32> to vector<16x32xf32>
    %98 = arith.subf %90, %97 : vector<16x32xf32>
    %99 = arith.mulf %98, %98 : vector<16x32xf32>
    %cst_30 = arith.constant dense<0.000000e+00> : vector<16xf32>
    %100 = vector.multi_reduction <add>, %99, %cst_30 [1] : vector<16x32xf32> to vector<16xf32>
    %101 = vector.shape_cast %100 : vector<16xf32> to vector<16x1xf32>
    %cst_31 = arith.constant 3.200000e+01 : f32
    %102 = vector.broadcast %cst_31 : f32 to vector<16x1xf32>
    %103 = arith.divf %101, %102 : vector<16x1xf32>
    %104 = vector.broadcast %96 : vector<16x1xf32> to vector<16x32xf32>
    %105 = arith.subf %90, %104 : vector<16x32xf32>
    %cst_32 = arith.constant 9.99999996E-13 : f32
    %106 = vector.broadcast %cst_32 : f32 to vector<16x1xf32>
    %107 = arith.addf %103, %106 : vector<16x1xf32>
    %108 = math.rsqrt %107 : vector<16x1xf32>
    %109 = vector.broadcast %108 : vector<16x1xf32> to vector<16x32xf32>
    %110 = arith.mulf %105, %109 : vector<16x32xf32>
    %111 = vector.broadcast %91 : vector<1x32xf32> to vector<16x32xf32>
    %112 = arith.mulf %110, %111 : vector<16x32xf32>
    %113 = vector.broadcast %92 : vector<1x32xf32> to vector<16x32xf32>
    %114 = arith.addf %112, %113 : vector<16x32xf32>
    %c0_33 = arith.constant 0 : index
    %c384 = arith.constant 384 : index
    %115 = vector.load %arg2[%c0_33, %c384] : memref<32x512xf32, #tpu.memory_space<vmem>>, vector<32x128xf32>
    %cst_34 = arith.constant dense<0.000000e+00> : vector<16x128xf32>
    %116 = tpu.matmul %114, %115, %cst_34 {dimension_numbers = #tpu.dot_dimension_numbers<[1], [0], [0], [1], [0, 0, 1, 1], [], []>} : vector<16x32xf32>, vector<32x128xf32>, vector<16x128xf32> -> vector<16x128xf32>
    %117 = vector.extract_strided_slice %2 {offsets = [8, 0], sizes = [1, 128], strides = [1, 1]} : vector<9x128xf32> to vector<1x128xf32>
    %118 = vector.broadcast %117 : vector<1x128xf32> to vector<16x128xf32>
    %119 = arith.addf %116, %118 : vector<16x128xf32>
    %c0_35 = arith.constant 0 : index
    %c0_36 = arith.constant 0 : index
    %120 = vector.load %arg5[%c0_35, %c0_36] : memref<16x128xf32, #tpu.memory_space<vmem>>, vector<16x128xf32>
    tpu.vector_store %arg5[%c0_35, %c0_36], %119 {strides = array<i32>} : memref<16x128xf32, #tpu.memory_space<vmem>>, vector<16x128xf32>,
    return
  }
}

</mosaic_0001>

<bundles_post_ra>
// kernel: bert_layer_pallas.1
= control target key start
LH: loop header
LB: loop body
LE: loop exit
PB: predicated region body
PF: predicated region fallthrough
CT: control target
= control target key end

     0   :  { %vm41_vm0 = vcmask 261120   ;;  %s1793_s0 = inlined_call_operand.vmem [shape: f32[16,32], index: 0, kind: input, shape index: {}]   ;;  %s1794_s1 = inlined_call_operand.vmem [shape: f32[64,64], index: 1, kind: input, shape index: {}]   ;;  %s1795_s2 = inlined_call_operand.vmem [shape: f32[32,512], index: 2, kind: input, shape index: {}]   ;;  %s1796_s3 = inlined_call_operand.vmem [shape: f32[64,32], index: 3, kind: input, shape index: {}]   ;;  %s1797_s4 = inlined_call_operand.vmem [shape: f32[9,128], index: 4, kind: input, shape index: {}]   ;;  %s1798_s5 = inlined_call_operand.hbm [shape: f32[16,128], index: 5, kind: output, shape index: {}]  }
   0x1   :  { %v33_v0 = vld [vmem:[%s1795_s2] sm:$0xff] }
   0x2   :  { %v34_v1 = vld [vmem:[%s1795_s2 + $0x20] sm:$0xff] }
   0x3   :  { %v35_v2 = vld [vmem:[%s1795_s2 + $0x40] sm:$0xff]  ;;  %v1278_v3 = vpack.c.bf16 %v34_v1, %v33_v0 }
   0x4   :  { %v36_v4 = vld [vmem:[%s1795_s2 + $0x60] sm:$0xff] }
   0x5   :  { %v1539_v5 = vld [vmem:[%s1793_s0] sm:$0xff]  ;;  %v1282_v6 = vpack.c.bf16 %v36_v4, %v35_v2 }
   0x6   :  { %1167 = vmatprep.mubr.msk.f32.mxu0 %vm41_vm0, %v1539_v5 }
   0x7   :  { %10 = vsyncpa [#allocation3], 0  ;;  %1279 = vmatprep.subr.bf16.mxu0 %v1278_v3  ;;  %v1546_v7 = vld [vmem:[%s1793_s0 + $0x8] sm:$0xff]  ;;  %v37_v8 = vlaneseq  ;;  %v1556_v11 = vld [vmem:[%s1797_s4] sm:$0xff]  ;;  %vm153_vm1 = vcmask 64512   ;;  %s1484_s0 = smov 80  }
   0x8   :  { %1281 = vmatpush3.bf16.msra.mxu0 %v1278_v3  ;;  %s1485_s7 = smov 104   ;;  %s1486_s8 = smov 56   ;;  %vm1574_vm2 = vmpackc.low %vm153_vm1, %vm153_vm1  ;;  %v24_v45 = vld [vmem:[%s1794_s1 + $0x8] sm:$0xff]  ;;  %v23_v48 = vld [vmem:[%s1794_s1] sm:$0xff]  ;;  %vm307_vm3 = vcmask 523264   ;;  %vm575_vm4 = vcmask 130048  }
   0x9   :  { %1283 = vmatprep.subr.bf16.mxu0 %v1282_v6  ;;  %v1550_v9 = vshrl.u32 %v37_v8, 7  ;;  %s1487_s9 = smov 120   ;;  %v25_v56 = vld [vmem:[%s1794_s1 + $0x10] sm:$0xff]  ;;  %v26_v59 = vld [vmem:[%s1794_s1 + $0x18] sm:$0xff]  ;;  %v27_v0 = vld [vmem:[%s1794_s1 + $0x20] sm:$0xff]  ;;  %s1488_s26 = smov 112  }
   0xa   :  { %v28_v4 = vld [vmem:[%s1794_s1 + $0x28] sm:$0xff]  ;;  %s1491_s10 = smov 24   ;;  %vm578_vm5 = vcmask 195584   ;;  %s1492_s17 = smov [#allocation2]  }
   0xb   :  { %v39_v10 = vsub.s32 0, %v1550_v9  ;;  %s1047_s18 = sshll.u32 %s1492_s17, 4  ;;  %s1048_s18 = int_to_ptr.vmem [resolvable:$true] %s1047_s18 }
   0xc   :  { %1285 = vmatpush3.bf16.msra.mxu0 %v1282_v6  ;;  %s1460_s19 = scalar_lea.vmem %s1048_s18, 256  ;;  %p1465_p1 = scmp.lt.s32.totalorder %s1048_s18, %s1048_s18 }
   0xd   :  { %v40_v12 = vrot.slane %v1556_v11, %v39_v10  ;;  %p1461_p0 = scmp.ne.s32.totalorder %s1048_s18, %s1460_s19  ;;  %p1466_p2 = scmp.lt.s32.totalorder %s1460_s19, %s1460_s19 }
   0xf   :  { %1168 = vmatmul.mubr.msk.f32.vlgmr.msra.gmra.mrb[0].mxu0 %vm41_vm0, %v1546_v7  ;;  %p1467_p3 = por %p1466_p2, %p1465_p1 }
  0x11   :  { %p1468_p4 = pnand %p1467_p3, %p1461_p0 }
  0xe2   :  { %v1169_v13 = vpop.f32.mrb[0].mxu0 }
  0xe3   :  { %v114_v14 = vpop.f32.mrb[1].mxu0  ;;  %v120_v16 = vadd.f32 %v1169_v13, %v40_v12  ;;  %v29_v13 = vld [vmem:[%s1794_s1 + $0x30] sm:$0xff] }
  0xe4   :  { %v115_v15 = vadd.f32 %v114_v14, %v40_v12 }
  0xe6   :  { %129 = vrot.lane.b32.xlu1 %v115_v15, %s1484_s0  ;;  %125 = vrot.lane.b32.xlu0 %v115_v15, %s1485_s7  ;;  %v1560_v17 = vpack.i.bf16 %v120_v16, %v115_v15 }
  0xe7   :  { %1186 = vmatprep.mubr.msk.f32.mxu1 %vm153_vm1, %v115_v15 }
  0xea   :  { %131 = vrot.lane.b32.xlu1 %v120_v16, %s1484_s0  ;;  %127 = vrot.lane.b32.xlu0 %v120_v16, %s1485_s7 }
  0xee   :  { %135 = vrot.lane.b32.xlu1 %v120_v16, %s1486_s8  ;;  %133 = vrot.lane.b32.xlu0 %v115_v15, %s1486_s8  ;;  %s1489_s8 = smov 8  }
  0xf2   :  { %1377 = vrot.lane.b32.xlu0 %v1560_v17, %s1487_s9 }
 0x158   :  { %v130_v18 = vpop.permute.xlu1 %129  ;;  %v126_v19 = vpop.permute.xlu0 %125 }
 0x15c   :  { %v132_v20 = vpop.permute.xlu1 %131  ;;  %v128_v21 = vpop.permute.xlu0 %127 }
 0x15d   :  { %v1563_v22 = vpack.i.bf16 %v132_v20, %v130_v18  ;;  %v1565_v23 = vpack.i.bf16 %v128_v21, %v126_v19 }
 0x15f   :  { %1387 = vrot.lane.b32.xlu0 %v1563_v22, %s1487_s9  ;;  %1382 = vrot.lane.b32.xlu1 %v1565_v23, %s1487_s9 }
 0x160   :  { %v136_v24 = vpop.permute.xlu1 %135  ;;  %v134_v25 = vpop.permute.xlu0 %133 }
 0x161   :  { %v1569_v26 = vpack.i.bf16 %v136_v24, %v134_v25 }
 0x163   :  { %1392 = vrot.lane.b32.xlu1 %v1569_v26, %s1487_s9  ;;  %s1490_s9 = smov 16  }
 0x164   :  { %v1378_v27 = vpop.permute.xlu0 %1377 }
 0x165   :  { %v1380_v28 = vunpack.i.h.bf16 %v1378_v27  ;;  %v1379_v29 = vunpack.i.l.bf16 %v1378_v27 }
 0x167   :  { %v1286_v31 = vpack.c.bf16 %v1380_v28, %v1379_v29 }
 0x169   :  { %1288 = vmatprep.subr.msk.bf16.mxu1 %vm1574_vm2, %v1286_v31 }
 0x16a   :  { %1291 = vmatpush3.bf16.xpose.msk.msra.mxu1 %vm1574_vm2, %v1286_v31 }
 0x1d1   :  { %v1383_v32 = vpop.permute.xlu1 %1382  ;;  %v1388_v33 = vpop.permute.xlu0 %1387 }
 0x1d2   :  { %v1385_v34 = vunpack.i.h.bf16 %v1383_v32  ;;  %v1384_v35 = vunpack.i.l.bf16 %v1383_v32  ;;  %v1390_v36 = vunpack.i.h.bf16 %v1388_v33  ;;  %v1389_v37 = vunpack.i.l.bf16 %v1388_v33 }
 0x1d4   :  { %v1292_v38 = vpack.c.bf16 %v1385_v34, %v1384_v35  ;;  %v1298_v39 = vpack.c.bf16 %v1390_v36, %v1389_v37 }
 0x1d5   :  { %v1393_v40 = vpop.permute.xlu1 %1392 }
 0x1d6   :  { %1294 = vmatprep.subr.msk.bf16.mxu1 %vm1574_vm2, %v1292_v38  ;;  %v1395_v41 = vunpack.i.h.bf16 %v1393_v40  ;;  %v1394_v42 = vunpack.i.l.bf16 %v1393_v40 }
 0x1d7   :  { %1297 = vmatpush3.bf16.xpose.msk.msra.mxu1 %vm1574_vm2, %v1292_v38 }
 0x1d8   :  { %1300 = vmatprep.subr.msk.bf16.mxu1 %vm1574_vm2, %v1298_v39  ;;  %v1304_v43 = vpack.c.bf16 %v1395_v41, %v1394_v42 }
 0x1df   :  { %1303 = vmatpush3.bf16.xpose.msk.msra.mxu1 %vm1574_vm2, %v1298_v39 }
 0x1e0   :  { %1306 = vmatprep.subr.msk.bf16.mxu1 %vm1574_vm2, %v1304_v43 }
 0x1e7   :  { %1309 = vmatpush3.bf16.xpose.msk.msra.mxu1 %vm1574_vm2, %v1304_v43 }
 0x1ee   :  { %1187 = vmatmul.mubr.msk.f32.vlgmr.msra.gmra.mrb[0].mxu1 %vm153_vm1, %v120_v16 }
 0x1ef   :  { %1189 = vmatprep.mubr.msk.f32.mxu1 %vm153_vm1, %v126_v19  ;;  %v30_v19 = vld [vmem:[%s1794_s1 + $0x38] sm:$0xff] }
 0x1f2   :  { %1190 = vmatmul.mubr.msk.f32.gmra.mrb[2].mxu1 %vm153_vm1, %v128_v21 }
 0x1f3   :  { %1192 = vmatprep.mubr.msk.f32.mxu1 %vm153_vm1, %v130_v18 }
 0x1f6   :  { %1193 = vmatmul.mubr.msk.f32.gmra.mrb[4].mxu1 %vm153_vm1, %v132_v20 }
 0x1f7   :  { %1195 = vmatprep.mubr.msk.f32.mxu1 %vm153_vm1, %v134_v25 }
 0x1fa   :  { %1196 = vmatmul.mubr.msk.f32.gmra.mrb[6].mxu1 %vm153_vm1, %v136_v24 }
 0x2c1   :  { %v1188_v44 = vpop.f32.mrb[0].mxu1 }
 0x2c2   :  { %v292_v46 = vmul.f32 0.35355338, %v1188_v44  ;;  %v252_v47 = vpop.f32.mrb[1].mxu1 }
 0x2c3   :  { %v291_v49 = vmul.f32 0.35355338, %v252_v47 }
 0x2c4   :  { %v300_v50 = vadd.f32 %v292_v46, %v24_v45 }
 0x2c5   :  { %v1191_v51 = vpop.f32.mrb[2].mxu1  ;;  %v299_v52 = vadd.f32 %v291_v49, %v23_v48 }
 0x2c6   :  { %v294_v53 = vmul.f32 0.35355338, %v1191_v51  ;;  %v262_v54 = vpop.f32.mrb[3].mxu1  ;;  %v311_v55 = vsel %vm307_vm3, %v300_v50, -inf }
 0x2c7   :  { %v293_v57 = vmul.f32 0.35355338, %v262_v54  ;;  %312 = vmax.xlane.f32.xlu1 %v311_v55  ;;  %v308_v58 = vsel %vm307_vm3, %v299_v52, -inf }
 0x2c8   :  { %309 = vmax.xlane.f32.xlu0 %v308_v58  ;;  %v302_v63 = vadd.f32 %v294_v53, %v26_v59 }
 0x2c9   :  { %v1194_v60 = vpop.f32.mrb[4].mxu1  ;;  %v301_v61 = vadd.f32 %v293_v57, %v25_v56 }
 0x2ca   :  { %v272_v62 = vpop.f32.mrb[5].mxu1  ;;  %v296_v1 = vmul.f32 0.35355338, %v1194_v60  ;;  %v317_v12 = vsel %vm307_vm3, %v302_v63, -inf }
 0x2cb   :  { %v295_v2 = vmul.f32 0.35355338, %v272_v62  ;;  %v314_v3 = vsel %vm307_vm3, %v301_v61, -inf }
 0x2cc   :  { %315 = vmax.xlane.f32.xlu0 %v314_v3  ;;  %v304_v18 = vadd.f32 %v296_v1, %v28_v4 }
 0x2cd   :  { %v1197_v6 = vpop.f32.mrb[6].mxu1  ;;  %v303_v8 = vadd.f32 %v295_v2, %v27_v0 }
 0x2ce   :  { %v282_v10 = vpop.f32.mrb[7].mxu1  ;;  %v298_v14 = vmul.f32 0.35355338, %v1197_v6  ;;  %v323_v21 = vsel %vm307_vm3, %v304_v18, -inf }
 0x2cf   :  { %v297_v15 = vmul.f32 0.35355338, %v282_v10  ;;  %v320_v16 = vsel %vm307_vm3, %v303_v8, -inf }
 0x2d0   :  { %318 = vmax.xlane.f32.xlu0 %v317_v12  ;;  %321 = vmax.xlane.f32.xlu1 %v320_v16  ;;  %v306_v25 = vadd.f32 %v298_v14, %v30_v19 }
 0x2d1   :  { %v305_v20 = vadd.f32 %v297_v15, %v29_v13 }
 0x2d2   :  { %v329_v27 = vsel %vm307_vm3, %v306_v25, -inf }
 0x2d3   :  { %v326_v24 = vsel %vm307_vm3, %v305_v20, -inf }
 0x2d4   :  { %324 = vmax.xlane.f32.xlu0 %v323_v21  ;;  %327 = vmax.xlane.f32.xlu1 %v326_v24 }
 0x2d8   :  { %330 = vmax.xlane.f32.xlu0 %v329_v27 }
 0x2e5   :  { %1397 = vrot.lane.b32.xlu1 %v1560_v17, %s1488_s26 }
 0x354   :  { %v313_v28 = vpop.xlane.xlu1 %312 }
 0x355   :  { %v333_v29 = vsub.f32 %v300_v50, %v313_v28  ;;  %v310_v30 = vpop.xlane.xlu0 %309 }
 0x356   :  { %v332_v31 = vsub.f32 %v299_v52, %v310_v30 }
 0x357   :  { %v342_v32 = vmul.f32 1.442695, %v333_v29 }
 0x358   :  { %v340_v33 = vmul.f32 1.442695, %v332_v31 }
 0x359   :  { %1416 = vpow2.f32 %v342_v32  ;;  %v316_v34 = vpop.xlane.xlu0 %315 }
 0x35a   :  { %1418 = vpow2.f32 %v340_v33  ;;  %v334_v35 = vsub.f32 %v301_v61, %v316_v34 }
 0x35c   :  { %v344_v36 = vmul.f32 1.442695, %v334_v35 }
 0x35d   :  { %v319_v37 = vpop.xlane.xlu0 %318  ;;  %v322_v38 = vpop.xlane.xlu1 %321 }
 0x35e   :  { %1420 = vpow2.f32 %v344_v36  ;;  %v335_v39 = vsub.f32 %v302_v63, %v319_v37  ;;  %v336_v40 = vsub.f32 %v303_v8, %v322_v38 }
 0x360   :  { %v346_v41 = vmul.f32 1.442695, %v335_v39  ;;  %v348_v42 = vmul.f32 1.442695, %v336_v40 }
 0x361   :  { %v325_v43 = vpop.xlane.xlu0 %324  ;;  %v328_v17 = vpop.xlane.xlu1 %327 }
 0x362   :  { %1422 = vpow2.f32 %v346_v41  ;;  %v337_v44 = vsub.f32 %v304_v18, %v325_v43  ;;  %v338_v48 = vsub.f32 %v305_v20, %v328_v17 }
 0x363   :  { %v1635_v45 = vpop.eup %1416  ;;  %1424 = vpow2.f32 %v348_v42 }
 0x364   :  { %v1419_v46 = vpop.eup %1418  ;;  %v350_v47 = vmul.f32 1.442695, %v337_v44  ;;  %v359_v49 = vsel %vm307_vm3, %v1635_v45, 0.0  ;;  %v352_v57 = vmul.f32 1.442695, %v338_v48  ;;  %v582_v48 = vld [vmem:[%s1795_s2 + $0x28] sm:$0xff] }
 0x365   :  { %360 = vadd.xlane.f32.xlu0 %v359_v49  ;;  %v331_v50 = vpop.xlane.xlu0 %330  ;;  %v1398_v51 = vpop.permute.xlu1 %1397  ;;  %v356_v52 = vsel %vm307_vm3, %v1419_v46, 0.0 }
 0x366   :  { %1426 = vpow2.f32 %v350_v47  ;;  %v339_v53 = vsub.f32 %v306_v25, %v331_v50  ;;  %v1400_v54 = vunpack.i.h.bf16 %v1398_v51  ;;  %v1399_v55 = vunpack.i.l.bf16 %v1398_v51  ;;  %357 = vadd.xlane.f32.xlu1 %v356_v52  ;;  %v581_v47 = vld [vmem:[%s1795_s2 + $0x8] sm:$0xff] }
 0x367   :  { %v1326_v49 = vpack.c.bf16 %v582_v48, %v581_v47  ;;  %v583_v50 = vld [vmem:[%s1795_s2 + $0x48] sm:$0xff] }
 0x368   :  { %v1640_v56 = vpop.eup %1420  ;;  %v354_v58 = vmul.f32 1.442695, %v339_v53  ;;  %v1310_v59 = vpack.c.bf16 %v1400_v54, %v1399_v55  ;;  %v584_v51 = vld [vmem:[%s1795_s2 + $0x68] sm:$0xff] }
 0x369   :  { %v362_v60 = vsel %vm307_vm3, %v1640_v56, 0.0  ;;  %v1330_v52 = vpack.c.bf16 %v584_v51, %v583_v50 }
 0x36a   :  { %1428 = vpow2.f32 %v354_v58  ;;  %363 = vadd.xlane.f32.xlu1 %v362_v60  ;;  %1311 = vmatprep.subr.bf16.mxu0 %v1310_v59 }
 0x36b   :  { %1313 = vmatpush3.bf16.msra.mxu0 %v1310_v59  ;;  %1430 = vpow2.f32 %v352_v57 }
 0x36c   :  { %v1644_v61 = vpop.eup %1422 }
 0x36d   :  { %v1646_v62 = vpop.eup %1424  ;;  %v365_v63 = vsel %vm307_vm3, %v1644_v61, 0.0 }
 0x36e   :  { %366 = vadd.xlane.f32.xlu0 %v365_v63  ;;  %v368_v0 = vsel %vm307_vm3, %v1646_v62, 0.0 }
 0x36f   :  { %369 = vadd.xlane.f32.xlu1 %v368_v0 }
 0x370   :  { %v1652_v1 = vpop.eup %1426 }
 0x371   :  { %v371_v2 = vsel %vm307_vm3, %v1652_v1, 0.0 }
 0x372   :  { %372 = vadd.xlane.f32.xlu0 %v371_v2 }
 0x374   :  { %v1656_v3 = vpop.eup %1428 }
 0x375   :  { %v377_v4 = vsel %vm307_vm3, %v1656_v3, 0.0  ;;  %v1431_v6 = vpop.eup %1430 }
 0x376   :  { %378 = vadd.xlane.f32.xlu0 %v377_v4  ;;  %v374_v8 = vsel %vm307_vm3, %v1431_v6, 0.0 }
 0x37a   :  { %375 = vadd.xlane.f32.xlu0 %v374_v8 }
 0x380   :  { %1407 = vrot.lane.b32.xlu1 %v1563_v22, %s1488_s26 }
 0x384   :  { %1412 = vrot.lane.b32.xlu1 %v1569_v26, %s1488_s26 }
 0x390   :  { %1402 = vrot.lane.b32.xlu0 %v1565_v23, %s1488_s26 }
 0x3f2   :  { %v361_v12 = vpop.xlane.xlu0 %360 }
 0x3f3   :  { %v358_v10 = vpop.xlane.xlu1 %357 }
 0x3f4   :  { %1432 = vrcp.f32 %v358_v10 }
 0x3f5   :  { %1434 = vrcp.f32 %v361_v12 }
 0x3f7   :  { %v364_v13 = vpop.xlane.xlu1 %363 }
 0x3f8   :  { %1436 = vrcp.f32 %v364_v13  ;;  %v587_v13 = vsub.s32 1, %v1550_v9 }
 0x3fb   :  { %v367_v14 = vpop.xlane.xlu0 %366 }
 0x3fc   :  { %v370_v19 = vpop.xlane.xlu1 %369  ;;  %1438 = vrcp.f32 %v367_v14  ;;  %v588_v14 = vrot.slane %v1556_v11, %v587_v13 }
 0x3fd   :  { %1440 = vrcp.f32 %v370_v19 }
 0x3fe   :  { %v1433_v15 = vpop.eup %1432 }
 0x3ff   :  { %v373_v16 = vpop.xlane.xlu0 %372  ;;  %v388_v18 = vmul.f32 %v1433_v15, %v1419_v46  ;;  %v1435_v34 = vpop.eup %1434 }
 0x400   :  { %v1408_v21 = vpop.permute.xlu1 %1407  ;;  %1442 = vrcp.f32 %v373_v16  ;;  %v389_v36 = vmul.f32 %v1435_v34, %v1635_v45 }
 0x401   :  { %1214 = vmatprep.mubr.msk.f32.mxu0 %vm307_vm3, %v388_v18  ;;  %v1410_v25 = vunpack.i.h.bf16 %v1408_v21  ;;  %v1409_v26 = vunpack.i.l.bf16 %v1408_v21 }
 0x402   :  { %v1437_v35 = vpop.eup %1436 }
 0x403   :  { %v379_v20 = vpop.xlane.xlu0 %378  ;;  %v1318_v30 = vpack.c.bf16 %v1410_v25, %v1409_v26  ;;  %v390_v38 = vmul.f32 %v1437_v35, %v1640_v56  ;;  %v713_v35 = vld [vmem:[%s1795_s2 + $0x50] sm:$0xff] }
 0x404   :  { %v1413_v23 = vpop.permute.xlu1 %1412 }
 0x405   :  { %v1415_v31 = vunpack.i.h.bf16 %v1413_v23  ;;  %v1414_v32 = vunpack.i.l.bf16 %v1413_v23 }
 0x406   :  { %v1439_v37 = vpop.eup %1438 }
 0x407   :  { %v376_v22 = vpop.xlane.xlu0 %375  ;;  %v1322_v33 = vpack.c.bf16 %v1415_v31, %v1414_v32  ;;  %v1441_v39 = vpop.eup %1440  ;;  %v391_v40 = vmul.f32 %v1439_v37, %v1644_v61 }
 0x408   :  { %1444 = vrcp.f32 %v376_v22  ;;  %v392_v42 = vmul.f32 %v1441_v39, %v1646_v62 }
 0x409   :  { %1446 = vrcp.f32 %v379_v20 }
 0x40a   :  { %v1443_v41 = vpop.eup %1442 }
 0x40b   :  { %v1403_v24 = vpop.permute.xlu0 %1402  ;;  %v393_v17 = vmul.f32 %v1443_v41, %v1652_v1 }
 0x40c   :  { %v1405_v27 = vunpack.i.h.bf16 %v1403_v24  ;;  %v1404_v28 = vunpack.i.l.bf16 %v1403_v24 }
 0x40e   :  { %v1314_v29 = vpack.c.bf16 %v1405_v27, %v1404_v28 }
 0x410   :  { %1315 = vmatprep.subr.bf16.mxu0 %v1314_v29 }
 0x411   :  { %1317 = vmatpush3.bf16.msra.mxu0 %v1314_v29 }
 0x412   :  { %1319 = vmatprep.subr.bf16.mxu0 %v1318_v30  ;;  %v1445_v43 = vpop.eup %1444 }
 0x413   :  { %v1447_v44 = vpop.eup %1446  ;;  %v394_v45 = vmul.f32 %v1445_v43, %v1431_v6 }
 0x414   :  { %v395_v46 = vmul.f32 %v1447_v44, %v1656_v3  ;;  %v707_v44 = vsub.s32 3, %v1550_v9 }
 0x415   :  { %1321 = vmatpush3.bf16.msra.mxu0 %v1318_v30 }
 0x416   :  { %1323 = vmatprep.subr.bf16.mxu0 %v1322_v33  ;;  %v708_v48 = vrot.slane %v1556_v11, %v707_v44 }
 0x419   :  { %1325 = vmatpush3.bf16.msra.mxu0 %v1322_v33  ;;  %v712_v33 = vld [vmem:[%s1795_s2 + $0x30] sm:$0xff] }
 0x41a   :  { %1327 = vmatprep.subr.bf16.mxu0 %v1326_v49 }
 0x41c   :  { %1215 = vmatmul.mubr.msk.f32.vlgmr.msra.gmra.mrb[2].mxu0 %vm307_vm3, %v389_v36  ;;  %v714_v36 = vld [vmem:[%s1795_s2 + $0x70] sm:$0xff] }
 0x41d   :  { %1217 = vmatprep.mubr.msk.f32.mxu0 %vm307_vm3, %v390_v38  ;;  %1329 = vmatpush3.bf16.msra.mxu0 %v1326_v49  ;;  %v1338_v37 = vpack.c.bf16 %v714_v36, %v713_v35 }
 0x41e   :  { %1331 = vmatprep.subr.bf16.mxu0 %v1330_v52 }
 0x420   :  { %1218 = vmatmul.mubr.msk.f32.gmra.mrb[4].mxu0 %vm307_vm3, %v391_v40 }
 0x421   :  { %1220 = vmatprep.mubr.msk.f32.mxu0 %vm307_vm3, %v392_v42  ;;  %1333 = vmatpush3.bf16.msra.mxu0 %v1330_v52 }
 0x424   :  { %1221 = vmatmul.mubr.msk.f32.gmra.mrb[6].mxu0 %vm307_vm3, %v393_v17  ;;  %v701_v17 = vsub.s32 2, %v1550_v9 }
 0x425   :  { %1223 = vmatprep.mubr.msk.f32.mxu0 %vm307_vm3, %v394_v45 }
 0x426   :  { %v702_v45 = vrot.slane %v1556_v11, %v701_v17 }
 0x428   :  { %1224 = vmatmul.mubr.msk.f32.gmra.mrb[8].mxu0 %vm307_vm3, %v395_v46 }
 0x4ef   :  { %v1216_v53 = vpop.f32.mrb[2].mxu0 }
 0x4f0   :  { %v510_v54 = vpop.f32.mrb[3].mxu0 }
 0x4f3   :  { %v1219_v55 = vpop.f32.mrb[4].mxu0 }
 0x4f4   :  { %553 = vrot.lane.b32.xlu1 %v1219_v55, %s1489_s8  ;;  %v520_v56 = vpop.f32.mrb[5].mxu0  ;;  %v818_v55 = vld [vmem:[%s1796_s3] sm:$0xff] }
 0x4f7   :  { %v1222_v57 = vpop.f32.mrb[6].mxu0 }
 0x4f8   :  { %551 = vrot.lane.b32.xlu1 %v520_v56, %s1489_s8  ;;  %v530_v58 = vpop.f32.mrb[7].mxu0  ;;  %v819_v56 = vld [vmem:[%s1796_s3 + $0x8] sm:$0xff] }
 0x4f9   :  { %559 = vrot.lane.b32.xlu0 %v530_v58, %s1490_s9  ;;  %v820_v58 = vld [vmem:[%s1796_s3 + $0x10] sm:$0xff] }
 0x4fb   :  { %v1225_v59 = vpop.f32.mrb[8].mxu0 }
 0x4fc   :  { %561 = vrot.lane.b32.xlu1 %v1222_v57, %s1490_s9  ;;  %v540_v60 = vpop.f32.mrb[9].mxu0  ;;  %v1342_v57 = vpack.c.bf16 %v819_v56, %v818_v55 }
 0x4fd   :  { %567 = vrot.lane.b32.xlu0 %v540_v60, %s1491_s10 }
 0x4fe   :  { %1343 = vmatprep.subr.bf16.mxu1 %v1342_v57 }
 0x4ff   :  { %1345 = vmatpush3.bf16.msra.mxu1 %v1342_v57 }
 0x500   :  { %569 = vrot.lane.b32.xlu1 %v1225_v59, %s1491_s10  ;;  %v821_v59 = vld [vmem:[%s1796_s3 + $0x18] sm:$0xff] }
 0x501   :  { %v1346_v60 = vpack.c.bf16 %v821_v59, %v820_v58 }
 0x503   :  { %1347 = vmatprep.subr.bf16.mxu1 %v1346_v60 }
 0x504   :  { %1349 = vmatpush3.bf16.msra.mxu1 %v1346_v60 }
 0x566   :  { %v554_v61 = vpop.permute.xlu1 %553 }
 0x567   :  { %v574_v6 = vsel %vm153_vm1, %v1216_v53, %v554_v61  ;;  %v822_v61 = vld [vmem:[%s1796_s3 + $0x20] sm:$0xff] }
 0x56a   :  { %v552_v62 = vpop.permute.xlu1 %551 }
 0x56b   :  { %v560_v63 = vpop.permute.xlu0 %559  ;;  %v573_v0 = vsel %vm153_vm1, %v510_v54, %v552_v62  ;;  %v823_v62 = vld [vmem:[%s1796_s3 + $0x28] sm:$0xff] }
 0x56c   :  { %v576_v2 = vsel %vm575_vm4, %v573_v0, %v560_v63  ;;  %v1350_v63 = vpack.c.bf16 %v823_v62, %v822_v61  ;;  %v824_v0 = vld [vmem:[%s1796_s3 + $0x30] sm:$0xff]  ;;  %v941_v61 = vsub.s32 6, %v1550_v9  ;;  %v947_v62 = vsub.s32 7, %v1550_v9 }
 0x56e   :  { %v562_v1 = vpop.permute.xlu1 %561  ;;  %1351 = vmatprep.subr.bf16.mxu1 %v1350_v63 }
 0x56f   :  { %v568_v3 = vpop.permute.xlu0 %567  ;;  %v577_v8 = vsel %vm575_vm4, %v574_v6, %v562_v1  ;;  %1353 = vmatpush3.bf16.msra.mxu1 %v1350_v63  ;;  %v825_v1 = vld [vmem:[%s1796_s3 + $0x38] sm:$0xff]  ;;  %v942_v63 = vrot.slane %v1556_v11, %v941_v61 }
 0x570   :  { %v579_v4 = vsel %vm578_vm5, %v576_v2, %v568_v3  ;;  %v1354_v2 = vpack.c.bf16 %v825_v1, %v824_v0  ;;  %v717_v3 = vsub.s32 4, %v1550_v9 }
 0x571   :  { %1234 = vmatprep.mubr.msk.f32.mxu0 %vm41_vm0, %v579_v4 }
 0x572   :  { %v570_v10 = vpop.permute.xlu1 %569  ;;  %1355 = vmatprep.subr.bf16.mxu1 %v1354_v2  ;;  %v718_v4 = vrot.slane %v1556_v11, %v717_v3 }
 0x573   :  { %v580_v12 = vsel %vm578_vm5, %v577_v8, %v570_v10  ;;  %1357 = vmatpush3.bf16.msra.mxu1 %v1354_v2 }
 0x574   :  { %1235 = vmatmul.mubr.msk.f32.vlgmr.msra.gmra.mrb[10].mxu0 %vm41_vm0, %v580_v12 }
 0x647   :  { %v1236_v15 = vpop.f32.mrb[10].mxu0 }
 0x648   :  { %v667_v16 = vadd.f32 %v1236_v15, %v588_v14  ;;  %v661_v18 = vpop.f32.mrb[11].mxu0 }
 0x649   :  { %v662_v19 = vadd.f32 %v661_v18, %v588_v14 }
 0x64a   :  { %v671_v20 = vadd.f32 %v667_v16, %v1546_v7 }
 0x64b   :  { %v670_v21 = vadd.f32 %v662_v19, %v1539_v5  ;;  %v711_v5 = vld [vmem:[%s1795_s2 + $0x10] sm:$0xff] }
 0x64c   :  { %v675_v22 = vsel %vm41_vm0, %v671_v20, 0.0  ;;  %v1334_v34 = vpack.c.bf16 %v712_v33, %v711_v5 }
 0x64d   :  { %676 = vadd.xlane.f32.xlu1 %v675_v22  ;;  %v672_v24 = vsel %vm41_vm0, %v670_v21, 0.0 }
 0x64e   :  { %673 = vadd.xlane.f32.xlu0 %v672_v24  ;;  %1335 = vmatprep.subr.bf16.mxu0 %v1334_v34 }
 0x64f   :  { %1337 = vmatpush3.bf16.msra.mxu0 %v1334_v34 }
 0x650   :  { %1339 = vmatprep.subr.bf16.mxu0 %v1338_v37 }
 0x653   :  { %1341 = vmatpush3.bf16.msra.mxu0 %v1338_v37 }
 0x6da   :  { %v677_v25 = vpop.xlane.xlu1 %676 }
 0x6db   :  { %v680_v26 = vmul.f32 0.03125, %v677_v25  ;;  %v674_v27 = vpop.xlane.xlu0 %673 }
 0x6dc   :  { %v679_v28 = vmul.f32 0.03125, %v674_v27 }
 0x6dd   :  { %v682_v23 = vsub.f32 %v671_v20, %v680_v26 }
 0x6de   :  { %v681_v29 = vsub.f32 %v670_v21, %v679_v28 }
 0x6df   :  { %v684_v32 = vmul.f32 %v682_v23, %v682_v23 }
 0x6e0   :  { %v683_v30 = vmul.f32 %v681_v29, %v681_v29 }
 0x6e1   :  { %v688_v7 = vsel %vm41_vm0, %v684_v32, 0.0  ;;  %v828_v32 = vsub.s32 5, %v1550_v9  ;;  %v1090_v9 = vld [vmem:[%s1797_s4 + $0x8] ss:$0 sm:$0xff] }
 0x6e2   :  { %v685_v31 = vsel %vm41_vm0, %v683_v30, 0.0 }
 0x6e3   :  { %686 = vadd.xlane.f32.xlu0 %v685_v31 }
 0x6e7   :  { %689 = vadd.xlane.f32.xlu0 %v688_v7  ;;  %v829_v7 = vrot.slane %v1556_v11, %v828_v32 }
 0x770   :  { %v687_v38 = vpop.xlane.xlu0 %686 }
 0x771   :  { %v691_v39 = vmul.f32 0.03125, %v687_v38 }
 0x773   :  { %v693_v40 = vadd.f32 1e-12, %v691_v39 }
 0x774   :  { %v690_v41 = vpop.xlane.xlu0 %689 }
 0x775   :  { %1448 = vrsqrt.f32 %v693_v40  ;;  %v692_v42 = vmul.f32 0.03125, %v690_v41 }
 0x777   :  { %v694_v43 = vadd.f32 1e-12, %v692_v42 }
 0x779   :  { %1450 = vrsqrt.f32 %v694_v43 }
 0x77f   :  { %v1449_v46 = vpop.eup %1448 }
 0x780   :  { %v697_v47 = vmul.f32 %v1449_v46, %v681_v29 }
 0x782   :  { %v703_v49 = vmul.f32 %v702_v45, %v697_v47 }
 0x783   :  { %v1451_v50 = vpop.eup %1450 }
 0x784   :  { %v698_v51 = vmul.f32 %v1451_v50, %v682_v23  ;;  %v709_v52 = vadd.f32 %v708_v48, %v703_v49  ;;  %v951_v49 = vld [vmem:[%s1795_s2 + $0x18] sm:$0xff] }
 0x785   :  { %v952_v50 = vld [vmem:[%s1795_s2 + $0x38] sm:$0xff] }
 0x786   :  { %v704_v53 = vmul.f32 %v702_v45, %v698_v51  ;;  %1245 = vmatprep.mubr.msk.f32.mxu0 %vm41_vm0, %v709_v52  ;;  %v1358_v51 = vpack.c.bf16 %v952_v50, %v951_v49 }
 0x788   :  { %v710_v54 = vadd.f32 %v708_v48, %v704_v53  ;;  %v954_v53 = vld [vmem:[%s1795_s2 + $0x78] sm:$0xff]  ;;  %1359 = vmatprep.subr.bf16.mxu0 %v1358_v51 }
 0x78a   :  { %1246 = vmatmul.mubr.msk.f32.vlgmr.msra.gmra.mrb[12].mxu0 %vm41_vm0, %v710_v54 }
 0x78b   :  { %1361 = vmatpush3.bf16.msra.mxu0 %v1358_v51 }
 0x85d   :  { %v1247_v6 = vpop.f32.mrb[12].mxu0 }
 0x85e   :  { %v797_v8 = vadd.f32 %v1247_v6, %v718_v4  ;;  %v791_v10 = vpop.f32.mrb[13].mxu0 }
 0x85f   :  { %v792_v12 = vadd.f32 %v791_v10, %v718_v4  ;;  %v948_v4 = vrot.slane %v1556_v11, %v947_v62 }
 0x860   :  { %v801_v13 = vmul.f32 %v797_v8, %v797_v8 }
 0x861   :  { %v800_v14 = vmul.f32 %v792_v12, %v792_v12 }
 0x862   :  { %v803_v15 = vmul.f32 %v801_v13, %v797_v8 }
 0x863   :  { %v802_v16 = vmul.f32 %v800_v14, %v792_v12 }
 0x864   :  { %v805_v18 = vmul.f32 0.044715, %v803_v15 }
 0x865   :  { %v804_v19 = vmul.f32 0.044715, %v802_v16 }
 0x866   :  { %v807_v20 = vadd.f32 %v805_v18, %v797_v8 }
 0x867   :  { %v806_v21 = vadd.f32 %v804_v19, %v792_v12 }
 0x868   :  { %v809_v22 = vmul.f32 0.7978846, %v807_v20 }
 0x869   :  { %v808_v24 = vmul.f32 0.7978846, %v806_v21 }
 0x86a   :  { %1452 = vtanh.f32 %v809_v22 }
 0x86b   :  { %1454 = vtanh.f32 %v808_v24 }
 0x874   :  { %v1453_v25 = vpop.eup %1452 }
 0x875   :  { %v1455_v26 = vpop.eup %1454  ;;  %v813_v27 = vadd.f32 1.0, %v1453_v25 }
 0x876   :  { %v812_v28 = vadd.f32 1.0, %v1455_v26 }
 0x877   :  { %v815_v23 = vmul.f32 0.5, %v813_v27 }
 0x878   :  { %v814_v29 = vmul.f32 0.5, %v812_v28 }
 0x879   :  { %v817_v31 = vmul.f32 %v815_v23, %v797_v8 }
 0x87a   :  { %v816_v30 = vmul.f32 %v814_v29, %v792_v12 }
 0x87c   :  { %1264 = vmatprep.mubr.msk.f32.mxu1 %vm307_vm3, %v816_v30 }
 0x87d   :  { %1265 = vmatmul.mubr.msk.f32.vlgmr.msra.gmra.mrb[8].mxu1 %vm307_vm3, %v817_v31 }
 0x950   :  { %v1266_v5 = vpop.f32.mrb[8].mxu1 }
 0x951   :  { %v908_v33 = vadd.f32 %v1266_v5, %v829_v7  ;;  %v902_v34 = vpop.f32.mrb[9].mxu1 }
 0x952   :  { %v903_v35 = vadd.f32 %v902_v34, %v829_v7 }
 0x953   :  { %v912_v36 = vadd.f32 %v908_v33, %v710_v54 }
 0x954   :  { %v911_v37 = vadd.f32 %v903_v35, %v709_v52  ;;  %v953_v52 = vld [vmem:[%s1795_s2 + $0x58] sm:$0xff] }
 0x955   :  { %v916_v38 = vsel %vm41_vm0, %v912_v36, 0.0  ;;  %v1362_v54 = vpack.c.bf16 %v954_v53, %v953_v52 }
 0x956   :  { %917 = vadd.xlane.f32.xlu0 %v916_v38  ;;  %v913_v39 = vsel %vm41_vm0, %v911_v37, 0.0 }
 0x957   :  { %914 = vadd.xlane.f32.xlu1 %v913_v39  ;;  %1363 = vmatprep.subr.bf16.mxu0 %v1362_v54 }
 0x958   :  { %1365 = vmatpush3.bf16.msra.mxu0 %v1362_v54 }
 0x9e3   :  { %v918_v40 = vpop.xlane.xlu0 %917 }
 0x9e4   :  { %v920_v41 = vmul.f32 0.03125, %v918_v40  ;;  %v915_v42 = vpop.xlane.xlu1 %914 }
 0x9e5   :  { %v919_v43 = vmul.f32 0.03125, %v915_v42 }
 0x9e6   :  { %v922_v17 = vsub.f32 %v912_v36, %v920_v41 }
 0x9e7   :  { %v921_v44 = vsub.f32 %v911_v37, %v919_v43 }
 0x9e8   :  { %v924_v45 = vmul.f32 %v922_v17, %v922_v17 }
 0x9e9   :  { %v923_v46 = vmul.f32 %v921_v44, %v921_v44 }
 0x9ea   :  { %v928_v47 = vsel %vm41_vm0, %v924_v45, 0.0 }
 0x9eb   :  { %929 = vadd.xlane.f32.xlu0 %v928_v47  ;;  %v925_v48 = vsel %vm41_vm0, %v923_v46, 0.0 }
 0x9ec   :  { %926 = vadd.xlane.f32.xlu1 %v925_v48 }
 0xa78   :  { %v930_v55 = vpop.xlane.xlu0 %929 }
 0xa79   :  { %v932_v56 = vmul.f32 0.03125, %v930_v55  ;;  %v927_v57 = vpop.xlane.xlu1 %926 }
 0xa7a   :  { %v931_v58 = vmul.f32 0.03125, %v927_v57 }
 0xa7b   :  { %v934_v59 = vadd.f32 1e-12, %v932_v56 }
 0xa7c   :  { %v933_v60 = vadd.f32 1e-12, %v931_v58 }
 0xa7d   :  { %1456 = vrsqrt.f32 %v934_v59 }
 0xa7e   :  { %1458 = vrsqrt.f32 %v933_v60 }
 0xa87   :  { %v1457_v0 = vpop.eup %1456 }
 0xa88   :  { %v1459_v1 = vpop.eup %1458  ;;  %v938_v2 = vmul.f32 %v1457_v0, %v922_v17 }
 0xa89   :  { %v937_v3 = vmul.f32 %v1459_v1, %v921_v44 }
 0xa8a   :  { %v944_v6 = vmul.f32 %v942_v63, %v938_v2 }
 0xa8b   :  { %v943_v8 = vmul.f32 %v942_v63, %v937_v3 }
 0xa8c   :  { %v950_v12 = vadd.f32 %v948_v4, %v944_v6 }
 0xa8d   :  { %v949_v10 = vadd.f32 %v948_v4, %v943_v8 }
 0xa8f   :  { %1275 = vmatprep.mubr.msk.f32.mxu0 %vm41_vm0, %v949_v10 }
 0xa90   :  { %1276 = vmatmul.mubr.msk.f32.vlgmr.msra.gmra.mrb[14].mxu0 %vm41_vm0, %v950_v12 }
 0xb63   :  { %v1277_v13 = vpop.f32.mrb[14].mxu0 }
 0xb64   :  { %v1037_v14 = vadd.f32 %v1277_v13, %v1090_v9  ;;  %v1031_v15 = vpop.f32.mrb[15].mxu0 }
 0xb65   :  { %v1032_v16 = vadd.f32 %v1090_v9, %v1031_v15 }
 0xb66   :  { %1041 = vst [vmem:[#allocation2 + $0x8] sm:$0xff] %v1037_v14 }
 0xb67   :  { %1040 = vst [vmem:[#allocation2] sm:$0xff] %v1032_v16 }
 0xb68   :  { %1471 = shalt.err (!%p1468_p4)
}
 0xb69   :  { %s1472_s4 = scalar_lea.hbm %s1798_s5, 256 }
 0xb6a   :  { %p1473_p5 = scmp.ne.s32.totalorder %s1798_s5, %s1472_s4  ;;  %p1476_p6 = scmp.lt.u32.totalorder %s1472_s4, %s1798_s5 }
 0xb6c   :  { %p1478_p7 = pnand %p1476_p6, %p1473_p5 }
 0xb6e   :  { %1481 = shalt.err (!%p1478_p7)
}
 0xb6f   :  { %s1493_s26 = smov 128  }
 0xb70   :  { %1053 = dma.vmem_to_hbm [thread:$0]  %s1048_s18, 256, %s1798_s5, [#allocation3], %s1493_s26, %s1493_s26, %s1489_s8  }
 0xb71   :  { %1482 = dma.done.wait [#allocation3], 256  }
 0xb72   :  { %1483 = vsyncadd [#allocation3], 4294967040 }
 0xb73   :  { %1057 = vsyncpa [#allocation3], 1 }

</bundles_post_ra>
